<compile_context>
chip_gen: v7x
topology: tpu7x:2x2x1
jax: 0.10.0
libtpu: 0.0.40
codegen_flags: <defaults>
</compile_context>

<pallas_src>
import functools
import math

import jax
import jax.numpy as jnp
from jax.experimental import pallas as pl
from jax.experimental.pallas import tpu as pltpu


# ---------------------------------------------------------------------------
# Batched GEMM + bias (hoisted input projection and output head).
# ---------------------------------------------------------------------------
def _dense_kernel(x_ref, w_ref, b_ref, o_ref):
    x = x_ref[...].astype(w_ref.dtype)       # operand cast only (bf16 opt-in)
    o_ref[...] = (jnp.dot(x, w_ref[...], preferred_element_type=jnp.float32)
                  + b_ref[...]).astype(o_ref.dtype)


def pallas_dense(x2d, w, b, *, tm=512):
    """(M, K) @ (K, N) + (1, N) -> (M, N) f32, grid 'parallel' over M rows."""
    M, K = x2d.shape
    N = w.shape[1]
    tm = min(tm, M)
    return pl.pallas_call(
        _dense_kernel,
        out_shape=jax.ShapeDtypeStruct((M, N), jnp.float32),
        grid_spec=pltpu.PrefetchScalarGridSpec(
            num_scalar_prefetch=0,
            grid=(pl.cdiv(M, tm),),
            in_specs=[pl.BlockSpec((tm, K), lambda i: (i, 0)),
                      pl.BlockSpec((K, N), lambda i: (0, 0)),
                      pl.BlockSpec((1, N), lambda i: (0, 0))],
            out_specs=pl.BlockSpec((tm, N), lambda i: (i, 0)),
        ),
        compiler_params=pltpu.CompilerParams(
            dimension_semantics=("parallel",)),
    )(x2d, w, b)


# ---------------------------------------------------------------------------
# Sequential LSTM recurrence: only the part that truly must be serial.
#   per step: gates = x_gates[t] + h @ W_hh^T ; activations ; c/h update.
# ---------------------------------------------------------------------------
def _lstm_recurrence_kernel(xg_ref, h0_ref, c0_ref, whh_ref,
                            hs_ref, hN_ref, cN_ref,
                            *, chunk, seq_len, needs_mask):
    s = pl.program_id(0)

    # Seed the resident state outputs once; they carry h/c across grid steps
    # (constant index_map -> VMEM-resident, written to HBM once at grid end).
    @pl.when(s == 0)
    def _seed():
        hN_ref[...] = h0_ref[...]
        cN_ref[...] = c0_ref[...]

    H = h0_ref.shape[-1]
    h = hN_ref[...]
    c = cN_ref[...]

    # Static, fully-unrolled chunk loop (chunk is a compile-time constant).
    for t in range(chunk):
        gates = xg_ref[t] + jnp.dot(h.astype(whh_ref.dtype), whh_ref[...],
                                    preferred_element_type=jnp.float32)
        i_g = jax.nn.sigmoid(gates[:, 0 * H:1 * H])
        f_g = jax.nn.sigmoid(gates[:, 1 * H:2 * H])
        g_g = jnp.tanh(gates[:, 2 * H:3 * H])
        o_g = jax.nn.sigmoid(gates[:, 3 * H:4 * H])
        c_new = f_g * c + i_g * g_g
        h_new = o_g * jnp.tanh(c_new)
        hs_ref[t] = h_new.astype(hs_ref.dtype)
        if needs_mask:                     # only emitted when T % chunk != 0
            valid = (s * chunk + t) < seq_len
            h = jnp.where(valid, h_new, h)
            c = jnp.where(valid, c_new, c)
        else:
            h, c = h_new, c_new

    hN_ref[...] = h
    cN_ref[...] = c


# ---------------------------------------------------------------------------
# Wrappers
# ---------------------------------------------------------------------------
def rnn_lstm_forward_seq(x_seq, params, h=None, c=None, *,
                         chunk=16, mxu_dtype=jnp.float32):
    """T fused sequential RNNLSTM.forward() calls.

    x_seq: (T, B, inp_size).  Optional h/c (shape (1,H) or (B,H)) resume a
    running state (the module's self.h/self.c); default = learnable h0/c0
    (the `init=True` path).  Returns (outs (T,B,O), h_new (B,H), c_new (B,H)).
    """
    T, B, I = x_seq.shape
    H = params["h0"].shape[-1]
    O = params["b_out"].shape[-1]
    G = 4 * H

    h_init = jnp.broadcast_to(params["h0"] if h is None else h,
                              (B, H)).astype(jnp.float32)
    c_init = jnp.broadcast_to(params["c0"] if c is None else c,
                              (B, H)).astype(jnp.float32)

    gate_bias = (params["b_ih"] + params["b_hh"]).astype(jnp.float32)
    w_ih_t = params["w_ih_t"].astype(mxu_dtype)
    w_hh_t = params["w_hh_t"].astype(mxu_dtype)
    w_out_t = params["w_out_t"].astype(mxu_dtype)

    # (1) Hoisted input projection: one batched GEMM at M = T*B.
    x_gates = pallas_dense(x_seq.reshape(T * B, I), w_ih_t, gate_bias)
    x_gates = x_gates.reshape(T, B, G)

    # (3) Chunk timesteps per grid iteration (pad T if not divisible).
    TT = max(1, min(chunk, T))
    n_chunks = pl.cdiv(T, TT)
    T_pad = n_chunks * TT
    needs_mask = (T_pad != T)
    if needs_mask:
        x_gates = jnp.concatenate(
            [x_gates, jnp.zeros((T_pad - T, B, G), jnp.float32)], axis=0)

    kernel = functools.partial(_lstm_recurrence_kernel,
                               chunk=TT, seq_len=T, needs_mask=needs_mask)

    def const(shape):
        nd = len(shape)
        return pl.BlockSpec(shape, lambda i, _nd=nd: (0,) * _nd)

    hs_pad, h_new, c_new = pl.pallas_call(
        kernel,
        out_shape=(
            jax.ShapeDtypeStruct((T_pad, B, H), jnp.float32),   # h per step
            jax.ShapeDtypeStruct((B, H), jnp.float32),          # final h
            jax.ShapeDtypeStruct((B, H), jnp.float32),          # final c
        ),
        grid_spec=pltpu.PrefetchScalarGridSpec(
            num_scalar_prefetch=0,
            grid=(n_chunks,),
            in_specs=[
                pl.BlockSpec((TT, B, G), lambda i: (i, 0, 0)),  # x-gate chunk
                const((B, H)),                                  # h0
                const((B, H)),                                  # c0
                const((H, G)),                                  # W_hh^T (resident)
            ],
            out_specs=(
                pl.BlockSpec((TT, B, H), lambda i: (i, 0, 0)),  # h per step
                const((B, H)),                                  # final h (carry)
                const((B, H)),                                  # final c (carry)
            ),
        ),
        compiler_params=pltpu.CompilerParams(
            dimension_semantics=("arbitrary",)),  # recurrence => sequential
    )(x_gates, h_init, c_init, w_hh_t)

    hs = hs_pad[:T]

    # (2) Hoisted Linear head: one batched GEMM at M = T*B.
    outs = pallas_dense(hs.reshape(T * B, H), w_out_t,
                        params["b_out"].astype(jnp.float32))
    return outs.reshape(T, B, O), h_new, c_new


def rnn_lstm_forward(x, params, h=None, c=None, **kw):
    """One forward() call of the PyTorch module (single LSTMCell step + head)."""
    outs, h_new, c_new = rnn_lstm_forward_seq(x[None], params, h=h, c=c, **kw)
    return outs[0], h_new, c_new


# ---------------------------------------------------------------------------
# Params / reference
# ---------------------------------------------------------------------------
def init_params(key, inp_size, out_size, hid_size):
    """Deterministic init mirroring torch.nn.LSTMCell / nn.Linear shapes."""
    ks = jax.random.split(key, 6)
    stdv = 1.0 / math.sqrt(hid_size)
    u = lambda k, shape, s: jax.random.uniform(k, shape, jnp.float32, -s, s)

    # PyTorch LSTMCell: weight_ih (4H, I), weight_hh (4H, H) -> stored transposed.
    w_ih_t = u(ks[0], (inp_size, 4 * hid_size), stdv)
    w_hh_t = u(ks[1], (hid_size, 4 * hid_size), stdv)
    b_ih = u(ks[2], (1, 4 * hid_size), stdv)
    b_hh = u(ks[3], (1, 4 * hid_size), stdv)

    # nn.Linear(hid, out): weight (O, H) -> transposed, bias (1, O)
    lin_s = 1.0 / math.sqrt(hid_size)
    w_out_t = u(ks[4], (hid_size, out_size), lin_s)
    b_out = u(ks[5], (1, out_size), lin_s)

    # Learnable initial state, zeros as in the module.
    h0 = jnp.zeros((1, hid_size), jnp.float32)
    c0 = jnp.zeros((1, hid_size), jnp.float32)

    return dict(w_ih_t=w_ih_t, w_hh_t=w_hh_t, b_ih=b_ih, b_hh=b_hh,
                w_out_t=w_out_t, b_out=b_out, h0=h0, c0=c0)


def reference_seq(x_seq, p):
    """Pure-JAX reference == calling the PyTorch module's forward() T times."""
    T, B, _ = x_seq.shape
    H = p["h0"].shape[-1]
    h = jnp.broadcast_to(p["h0"], (B, H))
    c = jnp.broadcast_to(p["c0"], (B, H))
    outs = []
    for t in range(T):
        gates = x_seq[t] @ p["w_ih_t"] + p["b_ih"] + h @ p["w_hh_t"] + p["b_hh"]
        i = jax.nn.sigmoid(gates[:, 0 * H:1 * H])
        f = jax.nn.sigmoid(gates[:, 1 * H:2 * H])
        g = jnp.tanh(gates[:, 2 * H:3 * H])
        o = jax.nn.sigmoid(gates[:, 3 * H:4 * H])
        c = f * c + i * g
        h = o * jnp.tanh(c)
        outs.append(h @ p["w_out_t"] + p["b_out"])
    return jnp.stack(outs), h, c


if __name__ == "__main__":
    T, B, INP, HID, OUT = 8, 2, 16, 32, 8

    key = jax.random.PRNGKey(0)
    k_x, k_p = jax.random.split(key)
    x_seq = jax.random.normal(k_x, (T, B, INP), jnp.float32)
    params = init_params(k_p, INP, OUT, HID)

    ref_outs, ref_h, ref_c = reference_seq(x_seq, params)

    # Fused-sequence path, multiple timestep-chunks per call (grid = 2 here).
    outs, h_new, c_new = rnn_lstm_forward_seq(x_seq, params, chunk=4)
    jax.block_until_ready((outs, h_new, c_new))
    assert outs.shape == (T, B, OUT)
    assert h_new.shape == (B, HID) and c_new.shape == (B, HID)
    assert jnp.allclose(outs, ref_outs, atol=1e-5, rtol=1e-5)
    assert jnp.allclose(h_new, ref_h, atol=1e-5, rtol=1e-5)
    assert jnp.allclose(c_new, ref_c, atol=1e-5, rtol=1e-5)

    # Non-divisible chunk exercises the padded/masked tail path.
    outs3, h3, c3 = rnn_lstm_forward_seq(x_seq, params, chunk=3)
    jax.block_until_ready((outs3, h3, c3))
    assert jnp.allclose(outs3, ref_outs, atol=1e-5, rtol=1e-5)
    assert jnp.allclose(h3, ref_h, atol=1e-5, rtol=1e-5)
    assert jnp.allclose(c3, ref_c, atol=1e-5, rtol=1e-5)

    # Single module-forward() steps: init step, then a resumed step (self.h/self.c).
    out0, h1, c1 = rnn_lstm_forward(x_seq[0], params)
    out1, h2, c2 = rnn_lstm_forward(x_seq[1], params, h=h1, c=c1)
    jax.block_until_ready((out0, out1))
    assert jnp.allclose(out0, ref_outs[0], atol=1e-5, rtol=1e-5)
    assert jnp.allclose(out1, ref_outs[1], atol=1e-5, rtol=1e-5)

    print("KERNEL_OK")
</pallas_src>

<mosaic_0001>
module attributes {stable_mosaic.version = 11 : i64} {
  func.func @_dense_kernel(%arg0: i32, %arg1: memref<16x16xf32, #tpu.memory_space<vmem>>, %arg2: memref<16x128xf32, #tpu.memory_space<vmem>>, %arg3: memref<1x128xf32, #tpu.memory_space<vmem>>, %arg4: memref<16x128xf32, #tpu.memory_space<vmem>>) attributes {dimension_semantics = [#tpu.dimension_semantics<parallel>], iteration_bounds = array<i64: 1>, scalar_prefetch = 0 : i64, scratch_operands = 0 : i64, tpu.core_type = #tpu.core_type<tc>, window_params = [{transform_indices = @transform_0, window_bounds = array<i64: 16, 16>}, {pipeline_mode = #tpu.pipeline_mode<synchronous>, transform_indices = @transform_1, window_bounds = array<i64: 16, 128>}, {pipeline_mode = #tpu.pipeline_mode<synchronous>, transform_indices = @transform_2, window_bounds = array<i64: 1, 128>}, {transform_indices = @transform_3, window_bounds = array<i64: 16, 128>}]} {
    %c0 = arith.constant 0 : index
    %c0_0 = arith.constant 0 : index
    %0 = vector.load %arg1[%c0, %c0_0] : memref<16x16xf32, #tpu.memory_space<vmem>>, vector<16x16xf32>
    %c0_1 = arith.constant 0 : index
    %c0_2 = arith.constant 0 : index
    %1 = vector.load %arg2[%c0_1, %c0_2] : memref<16x128xf32, #tpu.memory_space<vmem>>, vector<16x128xf32>
    %cst = arith.constant dense<0.000000e+00> : vector<16x128xf32>
    %2 = tpu.matmul %0, %1, %cst {dimension_numbers = #tpu.dot_dimension_numbers<[1], [0], [0], [1], [0, 0, 1, 1], [], []>} : vector<16x16xf32>, vector<16x128xf32>, vector<16x128xf32> -> vector<16x128xf32>
    %c0_3 = arith.constant 0 : index
    %c0_4 = arith.constant 0 : index
    %3 = vector.load %arg3[%c0_3, %c0_4] : memref<1x128xf32, #tpu.memory_space<vmem>>, vector<1x128xf32>
    %4 = vector.broadcast %3 : vector<1x128xf32> to vector<16x128xf32>
    %5 = arith.addf %2, %4 : vector<16x128xf32>
    %c0_5 = arith.constant 0 : index
    %c0_6 = arith.constant 0 : index
    %6 = vector.load %arg4[%c0_5, %c0_6] : memref<16x128xf32, #tpu.memory_space<vmem>>, vector<16x128xf32>
    tpu.vector_store %arg4[%c0_5, %c0_6], %5 {strides = array<i32>} : memref<16x128xf32, #tpu.memory_space<vmem>>, vector<16x128xf32>,
    return
  }
  func.func @transform_0(%arg0: i32) -> (i32, i32) {
    %c0_i32 = arith.constant 0 : i32
    %c0_i32_0 = arith.constant 0 : i32
    return %arg0, %c0_i32 : i32, i32
  }
  func.func @transform_1(%arg0: i32) -> (i32, i32) {
    %c0_i32 = arith.constant 0 : i32
    %c0_i32_0 = arith.constant 0 : i32
    %c0_i32_1 = arith.constant 0 : i32
    return %c0_i32, %c0_i32_0 : i32, i32
  }
  func.func @transform_2(%arg0: i32) -> (i32, i32) {
    %c0_i32 = arith.constant 0 : i32
    %c0_i32_0 = arith.constant 0 : i32
    %c0_i32_1 = arith.constant 0 : i32
    return %c0_i32, %c0_i32_0 : i32, i32
  }
  func.func @transform_3(%arg0: i32) -> (i32, i32) {
    %c0_i32 = arith.constant 0 : i32
    %c0_i32_0 = arith.constant 0 : i32
    return %arg0, %c0_i32 : i32, i32
  }
}

</mosaic_0001>

<bundles_post_ra>
// kernel: tpu_custom_call.1
= control target key start
LH: loop header
LB: loop body
LE: loop exit
PB: predicated region body
PF: predicated region fallthrough
CT: control target
= control target key end

     0   :  { %8 = vsyncpa [#allocation3], 0  ;;  %s324_s0 = inlined_call_operand.hbm [shape: f32[16,16], index: 0, kind: input, shape index: {}]   ;;  %s325_s1 = inlined_call_operand.hbm [shape: f32[16,128], index: 1, kind: input, shape index: {}]   ;;  %s326_s2 = inlined_call_operand.vmem [shape: f32[1,128], index: 2, kind: input, shape index: {}]   ;;  %s327_s3 = inlined_call_operand.hbm [shape: f32[16,128], index: 3, kind: output, shape index: {}]  }
   0x1   :  { %9 = vsyncpa [#allocation6], 0 }
   0x2   :  { %10 = vsyncpa [#allocation4], 0  ;;  %s251_s12 = smov [#allocation2]   ;;  %s179_s16 = scalar_lea.hbm %s324_s0, 256 }
   0x3   :  { %s16_s13 = sshll.u32 %s251_s12, 4  ;;  %p180_p0 = scmp.ne.s32.totalorder %s324_s0, %s179_s16  ;;  %s17_s13 = int_to_ptr.vmem [resolvable:$true] %s16_s13 }
   0x4   :  { %p183_p1 = scmp.lt.u32.totalorder %s179_s16, %s324_s0 }
   0x6   :  { %p185_p2 = pnand %p183_p1, %p180_p0 }
   0x8   :  { %188 = shalt.err (!%p185_p2)
}
   0x9   :  { %s189_s21 = scalar_lea.vmem %s17_s13, 256  ;;  %p194_p4 = scmp.lt.s32.totalorder %s17_s13, %s17_s13 }
   0xa   :  { %p190_p3 = scmp.ne.s32.totalorder %s17_s13, %s189_s21  ;;  %p195_p5 = scmp.lt.s32.totalorder %s189_s21, %s189_s21 }
   0xc   :  { %p196_p6 = por %p195_p5, %p194_p4 }
   0xe   :  { %p197_p7 = pnand %p196_p6, %p190_p3 }
  0x10   :  { %200 = shalt.err (!%p197_p7)
}
  0x11   :  { %s252_s22 = smov 128   ;;  %s253_s23 = smov 8  }
  0x12   :  { %22 = dma.hbm_to_vmem [thread:$0]  %s324_s0, 256, %s17_s13, [#allocation3], %s252_s22, %s252_s22, %s253_s23  }
  0x13   :  { %s254_s26 = smov [#allocation5]   ;;  %s201_s30 = scalar_lea.hbm %s325_s1, 256 }
  0x14   :  { %s28_s27 = sshll.u32 %s254_s26, 4  ;;  %p202_p8 = scmp.ne.s32.totalorder %s325_s1, %s201_s30  ;;  %s29_s27 = int_to_ptr.vmem [resolvable:$true] %s28_s27 }
  0x15   :  { %p205_p9 = scmp.lt.u32.totalorder %s201_s30, %s325_s1 }
  0x17   :  { %p207_p10 = pnand %p205_p9, %p202_p8 }
  0x19   :  { %210 = shalt.err (!%p207_p10)
}
  0x1a   :  { %s211_s8 = scalar_lea.vmem %s29_s27, 256  ;;  %p216_p12 = scmp.lt.s32.totalorder %s29_s27, %s29_s27 }
  0x1b   :  { %p212_p11 = scmp.ne.s32.totalorder %s29_s27, %s211_s8  ;;  %p217_p13 = scmp.lt.s32.totalorder %s211_s8, %s211_s8 }
  0x1d   :  { %p218_p0 = por %p217_p13, %p216_p12 }
  0x1f   :  { %p219_p1 = pnand %p218_p0, %p212_p11 }
  0x21   :  { %222 = shalt.err (!%p219_p1)
}
  0x22   :  { %34 = dma.hbm_to_vmem [thread:$0]  %s325_s1, 256, %s29_s27, [#allocation6], %s252_s22, %s252_s22, %s253_s23  }
  0x23   :  { %245 = dma.done.wait [#allocation3], 256  }
  0x24   :  { %246 = vsyncadd [#allocation3], 4294967040 }
  0x25   :  { %247 = dma.done.wait [#allocation6], 256  }
  0x26   :  { %248 = vsyncadd [#allocation6], 4294967040  ;;  %vm54_vm0 = vcmask 130048   ;;  %v45_v0 = vld [vmem:[#allocation5] sm:$0xff]  ;;  %v46_v1 = vld [vmem:[#allocation5 + $0x8] sm:$0xff]  ;;  %s255_s12 = smov [#allocation7]  }
  0x27   :  { %v43_v2 = vld [vmem:[#allocation2] sm:$0xff]  ;;  %v170_v3 = vpack.c.bf16 %v46_v1, %v45_v0  ;;  %v44_v4 = vld [vmem:[#allocation2 + $0x8] sm:$0xff]  ;;  %s143_s1 = sshll.u32 %s255_s12, 4  ;;  %s144_s1 = int_to_ptr.vmem [resolvable:$true] %s143_s1 }
  0x28   :  { %167 = vmatprep.mubr.msk.f32.mxu0 %vm54_vm0, %v43_v2  ;;  %v156_v5 = vld [vmem:[%s326_s2] ss:$0 sm:$0xff]  ;;  %s223_s13 = scalar_lea.vmem %s144_s1, 256  ;;  %p228_p3 = scmp.lt.s32.totalorder %s144_s1, %s144_s1 }
  0x29   :  { %171 = vmatprep.subr.bf16.mxu0 %v170_v3  ;;  %p224_p2 = scmp.ne.s32.totalorder %s144_s1, %s223_s13  ;;  %p229_p4 = scmp.lt.s32.totalorder %s223_s13, %s223_s13 }
  0x2a   :  { %173 = vmatpush3.bf16.msra.mxu0 %v170_v3 }
  0x2b   :  { %p230_p5 = por %p229_p4, %p228_p3 }
  0x2d   :  { %168 = vmatmul.mubr.msk.f32.vlgmr.msra.gmra.mrb[0].mxu0 %vm54_vm0, %v44_v4  ;;  %p231_p6 = pnand %p230_p5, %p224_p2 }
 0x100   :  { %v169_v6 = vpop.f32.mrb[0].mxu0 }
 0x101   :  { %v133_v7 = vadd.f32 %v169_v6, %v156_v5  ;;  %v127_v8 = vpop.f32.mrb[1].mxu0 }
 0x102   :  { %v128_v9 = vadd.f32 %v156_v5, %v127_v8 }
 0x103   :  { %137 = vst [vmem:[#allocation7 + $0x8] sm:$0xff] %v133_v7 }
 0x104   :  { %136 = vst [vmem:[#allocation7] sm:$0xff] %v128_v9 }
 0x105   :  { %234 = shalt.err (!%p231_p6)
}
 0x106   :  { %s235_s2 = scalar_lea.hbm %s327_s3, 256 }
 0x107   :  { %p236_p7 = scmp.ne.s32.totalorder %s327_s3, %s235_s2  ;;  %p239_p8 = scmp.lt.u32.totalorder %s235_s2, %s327_s3 }
 0x109   :  { %p241_p9 = pnand %p239_p8, %p236_p7 }
 0x10b   :  { %244 = shalt.err (!%p241_p9)
}
 0x10c   :  { %149 = dma.vmem_to_hbm [thread:$0]  %s144_s1, 256, %s327_s3, [#allocation4], %s252_s22, %s252_s22, %s253_s23  }
 0x10d   :  { %249 = dma.done.wait [#allocation4], 256  }
 0x10e   :  { %250 = vsyncadd [#allocation4], 4294967040 }
 0x10f   :  { %153 = vsyncpa [#allocation3], 1 }
 0x110   :  { %154 = vsyncpa [#allocation6], 1 }
 0x111   :  { %155 = vsyncpa [#allocation4], 1 }

</bundles_post_ra>
